<compile_context>
chip_gen: v6e
topology: v6e:2x2x1
jax: 0.10.0
libtpu: 0.0.40
codegen_flags: <defaults>
</compile_context>

<pallas_src>
import numpy as np
import jax
import jax.numpy as jnp
from jax.experimental import pallas as pl
from jax.experimental.pallas import tpu as pltpu

MARGIN = 1.0
_LANE = 128
_MAX_FULL_D = 4096              # above this, use the k-streamed fallback
_VMEM_TILE_BUDGET = 20 * 2**20  # double-buffered tile footprint budget


def _round_up(x, m):
    return ((x + m - 1) // m) * m


def _pick_tile(n, candidates=(512, 256, 128)):
    for t in candidates:
        if t <= n and n % t == 0:
            return t
    return n  # n is always a multiple of 128 here (inputs are padded)


# ----------------------------------------------------------------------------
# Kernel A (main path, D_pad <= _MAX_FULL_D): full-D blocks, no K grid axis.
# One [tm,Dp] x [tn,Dp]^T dot per (i,j), contracting the lane dim of BOTH
# operands on the MXU (no transposed RHS copy), bf16 operands / f32 accum.
# ----------------------------------------------------------------------------
def _pdist_full_d_kernel(ei_ref, ej_ref, sqi_ref, sqj_ref, out_ref):
    cross = jax.lax.dot_general(
        ei_ref[...], ej_ref[...],
        dimension_numbers=(((1,), (1,)), ((), ())),
        preferred_element_type=jnp.float32)
    d2 = sqi_ref[...] + sqj_ref[...] - 2.0 * cross
    out_ref[...] = jnp.maximum(d2, 0.0).astype(out_ref.dtype)


# ----------------------------------------------------------------------------
# Kernel B (huge-D fallback): k-last reduction grid, accumulating directly
# into the resident f32 output tile (no VMEM scratch); epilogue in-place.
# ----------------------------------------------------------------------------
def _pdist_kstream_kernel(ei_ref, ej_ref, sqi_ref, sqj_ref, out_ref):
    k = pl.program_id(2)

    @pl.when(k == 0)
    def _():
        out_ref[...] = jnp.zeros_like(out_ref)

    out_ref[...] += jax.lax.dot_general(
        ei_ref[...], ej_ref[...],
        dimension_numbers=(((1,), (1,)), ((), ())),
        preferred_element_type=jnp.float32)

    @pl.when(k == pl.num_programs(2) - 1)
    def _():
        d2 = sqi_ref[...] + sqj_ref[...] - 2.0 * out_ref[...]
        out_ref[...] = jnp.maximum(d2, 0.0)


def pairwise_sq_dists(emb, *, max_full_d=_MAX_FULL_D, out_dtype=jnp.bfloat16):
    """Padded [Np, Np] pairwise squared euclidean distances (ranking only)."""
    N, D = emb.shape
    Np = max(_round_up(N, _LANE), _LANE)
    Dp = max(_round_up(D, _LANE), _LANE)

    emb_f32 = emb.astype(jnp.float32)
    sq = jnp.sum(jnp.square(emb_f32), axis=1)          # exact f32 row norms
    sq_col = jnp.zeros((Np, 1), jnp.float32).at[:N, 0].set(sq)
    sq_row = jnp.zeros((1, Np), jnp.float32).at[0, :N].set(sq)

    # bf16 MXU operands (f32 accumulate); zero pad rows/cols contribute nothing.
    emb_p = jnp.zeros((Np, Dp), jnp.bfloat16).at[:N, :D].set(
        emb.astype(jnp.bfloat16))

    tm = _pick_tile(Np)
    tn = _pick_tile(Np)

    if Dp <= max_full_d:
        out_dt = out_dtype
        out_b = jnp.dtype(out_dt).itemsize

        def footprint(a, b):   # double-buffered VMEM estimate (bytes)
            return 2 * ((a * Dp + b * Dp) * 2 + a * b * out_b + (a + b) * 4)

        while footprint(tm, tn) > _VMEM_TILE_BUDGET and max(tm, tn) > _LANE:
            if tm >= tn:
                tm //= 2
            else:
                tn //= 2

        grid = (Np // tm, Np // tn)
        in_specs = [
            pl.BlockSpec((tm, Dp), lambda i, j: (i, 0)),  # full-D row block
            pl.BlockSpec((tn, Dp), lambda i, j: (j, 0)),  # full-D col block
            pl.BlockSpec((tm, 1), lambda i, j: (i, 0)),   # ||row||^2
            pl.BlockSpec((1, tn), lambda i, j: (0, j)),   # ||col||^2
        ]
        out_specs = pl.BlockSpec((tm, tn), lambda i, j: (i, j))
        kernel = _pdist_full_d_kernel
        semantics = ("parallel", "parallel")
        fp = footprint(tm, tn)
    else:
        # TODO(synk): for moderately large D a full-D resident LHS block
        # (index_map (i, 0) + in-kernel pl.ds over k) would further cut LHS
        # HBM re-reads; not needed for typical embedding dims.
        out_dt = jnp.float32               # accumulated in place -> keep f32
        tk = _pick_tile(Dp)
        grid = (Np // tm, Np // tn, Dp // tk)
        in_specs = [
            pl.BlockSpec((tm, tk), lambda i, j, k: (i, k)),
            pl.BlockSpec((tn, tk), lambda i, j, k: (j, k)),
            pl.BlockSpec((tm, 1), lambda i, j, k: (i, 0)),
            pl.BlockSpec((1, tn), lambda i, j, k: (0, j)),
        ]
        out_specs = pl.BlockSpec((tm, tn), lambda i, j, k: (i, j))
        kernel = _pdist_kstream_kernel
        semantics = ("parallel", "parallel", "arbitrary")
        fp = 2 * ((tm * tk + tn * tk) * 2 + tm * tn * 4 + (tm + tn) * 4)

    vmem_limit = int(min(32 * 2**20, max(16 * 2**20, fp + 8 * 2**20)))

    return pl.pallas_call(
        kernel,
        out_shape=jax.ShapeDtypeStruct((Np, Np), out_dt),
        grid=grid,
        in_specs=in_specs,
        out_specs=out_specs,
        compiler_params=pltpu.CompilerParams(
            dimension_semantics=semantics,
            vmem_limit_bytes=vmem_limit),
    )(emb_p, emb_p, sq_col, sq_row)


# ----------------------------------------------------------------------------
# Pair selector (HardNegativePairSelector semantics): all positive pairs plus
# the P closest different-label pairs.
# ----------------------------------------------------------------------------
def get_hard_pairs(emb, labels_np):
    N = emb.shape[0]
    labels_np = np.asarray(labels_np)

    # Positive pairs enumerated statically (concrete labels -> static P).
    iu_r, iu_c = np.triu_indices(N, k=1)
    same = labels_np[iu_r] == labels_np[iu_c]
    pos_idx_np = np.stack([iu_r[same], iu_c[same]], axis=1).astype(np.int32)
    P = int(pos_idx_np.shape[0])
    n_neg_cand = int((~same).sum())
    assert 0 < P <= n_neg_cand, "need at least P different-label candidate pairs"

    dist = pairwise_sq_dists(emb)                 # Pallas, padded [Np, Np]
    Np = dist.shape[0]

    labels_pad = np.full((Np,), -1, dtype=np.int64)
    labels_pad[:N] = labels_np
    labels_j = jnp.asarray(labels_pad, jnp.int32)
    row = jax.lax.broadcasted_iota(jnp.int32, (Np, Np), 0)
    col = jax.lax.broadcasted_iota(jnp.int32, (Np, Np), 1)
    valid = ((labels_j[:, None] != labels_j[None, :])
             & (row < col) & (row < N) & (col < N))
    scores = jnp.where(valid, -dist.astype(jnp.float32), -jnp.inf)

    # Two-stage top-k: per-row (sublane-parallel) then over Np*k1 candidates.
    k1 = min(P, Np)
    row_vals, row_cols = jax.lax.top_k(scores, k=k1)         # [Np, k1]
    _, flat_pos = jax.lax.top_k(row_vals.reshape(-1), k=P)
    neg_r = (flat_pos // k1).astype(jnp.int32)
    neg_c = row_cols.reshape(-1)[flat_pos].astype(jnp.int32)
    neg_idx = jnp.stack([neg_r, neg_c], axis=1)

    return jnp.asarray(pos_idx_np, dtype=jnp.int32), neg_idx


# ----------------------------------------------------------------------------
# Loss on the selected pairs — exact f32 per-pair distances from the
# embeddings (tiny P x D gathers); final mean in plain jnp (per perf review,
# a Pallas launch for a (1,P)+(1,Q) reduction costs more than it saves).
# ----------------------------------------------------------------------------
def online_contrastive_loss(embeddings, pos_idx, neg_idx, margin=MARGIN):
    emb = embeddings.astype(jnp.float32)
    pos = jnp.sum(jnp.square(emb[pos_idx[:, 0]] - emb[pos_idx[:, 1]]), axis=1)
    neg_d = jnp.sqrt(
        jnp.sum(jnp.square(emb[neg_idx[:, 0]] - emb[neg_idx[:, 1]]), axis=1))
    neg = jnp.square(jnp.maximum(margin - neg_d, 0.0))
    return jnp.mean(jnp.concatenate([pos, neg], axis=0))


def online_contrastive_forward(embeddings, labels_np, margin=MARGIN):
    pos_idx, neg_idx = get_hard_pairs(embeddings, labels_np)
    return online_contrastive_loss(embeddings, pos_idx, neg_idx, margin)


# ----------------------------------------------------------------------------
# Pure-JAX reference (mirrors the PyTorch forward; exact f32 distance matrix,
# independent single-stage top-k selection).
# ----------------------------------------------------------------------------
def _exact_sq_dists(emb):
    emb = emb.astype(jnp.float32)
    diff = emb[:, None, :] - emb[None, :, :]
    return jnp.sum(diff * diff, axis=-1)


def reference_forward(embeddings, labels_np, margin=MARGIN):
    N = embeddings.shape[0]
    labels_np = np.asarray(labels_np)
    iu_r, iu_c = np.triu_indices(N, k=1)
    same = labels_np[iu_r] == labels_np[iu_c]
    pos_idx = jnp.asarray(
        np.stack([iu_r[same], iu_c[same]], axis=1).astype(np.int32))
    P = int(pos_idx.shape[0])

    d = _exact_sq_dists(embeddings)
    labels = jnp.asarray(labels_np, jnp.int32)
    row = jax.lax.broadcasted_iota(jnp.int32, (N, N), 0)
    col = jax.lax.broadcasted_iota(jnp.int32, (N, N), 1)
    valid = (labels[:, None] != labels[None, :]) & (row < col)
    masked = jnp.where(valid, d, jnp.inf)
    _, flat = jax.lax.top_k(-masked.reshape(-1), k=P)
    neg_idx = jnp.stack([flat // N, flat % N], axis=1)

    emb = embeddings.astype(jnp.float32)
    pos = jnp.sum((emb[pos_idx[:, 0]] - emb[pos_idx[:, 1]]) ** 2, axis=1)
    neg_d = jnp.sqrt(jnp.sum((emb[neg_idx[:, 0]] - emb[neg_idx[:, 1]]) ** 2,
                             axis=1))
    neg = jnp.maximum(margin - neg_d, 0.0) ** 2
    return jnp.mean(jnp.concatenate([pos, neg], axis=0))


if __name__ == "__main__":
    key = jax.random.PRNGKey(0)
    N, D = 16, 32
    # Scale so hard-negative distances fall below the margin (both loss
    # branches exercised).
    embeddings = 0.1 * jax.random.normal(key, (N, D), dtype=jnp.float32)
    labels_np = (np.arange(N) % 2).astype(np.int32)        # two classes

    # (a) Validate the Pallas pairwise-distance kernel on both code paths
    #     against an exact f32 reference (bf16-operand tolerance).
    exact_d = jax.block_until_ready(_exact_sq_dists(embeddings))
    d_full = pairwise_sq_dists(embeddings)[:N, :N].astype(jnp.float32)
    d_kstr = pairwise_sq_dists(embeddings, max_full_d=0)[:N, :N]
    np.testing.assert_allclose(np.asarray(d_full), np.asarray(exact_d),
                               rtol=5e-2, atol=2e-2)
    np.testing.assert_allclose(np.asarray(d_kstr), np.asarray(exact_d),
                               rtol=5e-2, atol=2e-2)

    # (b) End-to-end forward vs the pure-JAX mirror of the PyTorch module.
    loss = jax.block_until_ready(online_contrastive_forward(embeddings, labels_np))
    ref = jax.block_until_ready(reference_forward(embeddings, labels_np))
    assert np.allclose(np.asarray(loss), np.asarray(ref), rtol=1e-3, atol=1e-3), \
        (loss, ref)

    print("KERNEL_OK")
</pallas_src>

<mosaic_0001>
module attributes {stable_mosaic.version = 11 : i64} {
  func.func @_pdist_full_d_kernel(%arg0: i32, %arg1: i32, %arg2: memref<128x128xbf16, #tpu.memory_space<vmem>>, %arg3: memref<128x128xbf16, #tpu.memory_space<vmem>>, %arg4: memref<128x1xf32, #tpu.memory_space<vmem>>, %arg5: memref<1x128xf32, #tpu.memory_space<vmem>>, %arg6: memref<128x128xbf16, #tpu.memory_space<vmem>>) attributes {dimension_semantics = [#tpu.dimension_semantics<parallel>, #tpu.dimension_semantics<parallel>], iteration_bounds = array<i64: 1, 1>, scalar_prefetch = 0 : i64, scratch_operands = 0 : i64, tpu.core_type = #tpu.core_type<tc>, window_params = [{transform_indices = @transform_0, window_bounds = array<i64: 128, 128>}, {transform_indices = @transform_1, window_bounds = array<i64: 128, 128>}, {transform_indices = @transform_2, window_bounds = array<i64: 128, 1>}, {transform_indices = @transform_3, window_bounds = array<i64: 1, 128>}, {transform_indices = @transform_4, window_bounds = array<i64: 128, 128>}]} {
    %c0 = arith.constant 0 : index
    %c0_0 = arith.constant 0 : index
    %0 = vector.load %arg2[%c0, %c0_0] : memref<128x128xbf16, #tpu.memory_space<vmem>>, vector<128x128xbf16>
    %c0_1 = arith.constant 0 : index
    %c0_2 = arith.constant 0 : index
    %1 = vector.load %arg3[%c0_1, %c0_2] : memref<128x128xbf16, #tpu.memory_space<vmem>>, vector<128x128xbf16>
    %cst = arith.constant dense<0.000000e+00> : vector<128x128xf32>
    %2 = tpu.matmul %0, %1, %cst {dimension_numbers = #tpu.dot_dimension_numbers<[1], [1], [0], [0], [0, 0, 1, 0], [], []>} : vector<128x128xbf16>, vector<128x128xbf16>, vector<128x128xf32> -> vector<128x128xf32>
    %c0_3 = arith.constant 0 : index
    %c0_4 = arith.constant 0 : index
    %3 = vector.load %arg4[%c0_3, %c0_4] : memref<128x1xf32, #tpu.memory_space<vmem>>, vector<128x1xf32>
    %c0_5 = arith.constant 0 : index
    %c0_6 = arith.constant 0 : index
    %4 = vector.load %arg5[%c0_5, %c0_6] : memref<1x128xf32, #tpu.memory_space<vmem>>, vector<1x128xf32>
    %5 = vector.broadcast %3 : vector<128x1xf32> to vector<128x128xf32>
    %6 = vector.broadcast %4 : vector<1x128xf32> to vector<128x128xf32>
    %7 = arith.addf %5, %6 : vector<128x128xf32>
    %cst_7 = arith.constant 2.000000e+00 : f32
    %8 = vector.broadcast %cst_7 : f32 to vector<128x128xf32>
    %9 = arith.mulf %8, %2 : vector<128x128xf32>
    %10 = arith.subf %7, %9 : vector<128x128xf32>
    %cst_8 = arith.constant 0.000000e+00 : f32
    %11 = vector.broadcast %cst_8 : f32 to vector<128x128xf32>
    %12 = arith.maximumf %10, %11 : vector<128x128xf32>
    %13 = arith.truncf %12 : vector<128x128xf32> to vector<128x128xbf16>
    %c0_9 = arith.constant 0 : index
    %c0_10 = arith.constant 0 : index
    %14 = vector.load %arg6[%c0_9, %c0_10] : memref<128x128xbf16, #tpu.memory_space<vmem>>, vector<128x128xbf16>
    tpu.vector_store %arg6[%c0_9, %c0_10], %13 {strides = array<i32>} : memref<128x128xbf16, #tpu.memory_space<vmem>>, vector<128x128xbf16>,
    return
  }
  func.func @transform_0(%arg0: i32, %arg1: i32) -> (i32, i32) {
    %c0_i32 = arith.constant 0 : i32
    %c0_i32_0 = arith.constant 0 : i32
    return %arg0, %c0_i32 : i32, i32
  }
  func.func @transform_1(%arg0: i32, %arg1: i32) -> (i32, i32) {
    %c0_i32 = arith.constant 0 : i32
    %c0_i32_0 = arith.constant 0 : i32
    return %arg1, %c0_i32 : i32, i32
  }
  func.func @transform_2(%arg0: i32, %arg1: i32) -> (i32, i32) {
    %c0_i32 = arith.constant 0 : i32
    %c0_i32_0 = arith.constant 0 : i32
    return %arg0, %c0_i32 : i32, i32
  }
  func.func @transform_3(%arg0: i32, %arg1: i32) -> (i32, i32) {
    %c0_i32 = arith.constant 0 : i32
    %c0_i32_0 = arith.constant 0 : i32
    return %c0_i32, %arg1 : i32, i32
  }
  func.func @transform_4(%arg0: i32, %arg1: i32) -> (i32, i32) {
    %c0_i32 = arith.constant 0 : i32
    return %arg0, %arg1 : i32, i32
  }
}

</mosaic_0001>

<bundles_post_ra>
// kernel: tpu_custom_call.1
= control target key start
LH: loop header
LB: loop body
LE: loop exit
PB: predicated region body
PF: predicated region fallthrough
CT: control target
= control target key end

     0   :  { %v711_v2 = vmov 0   ;;  %s872_s0 = inlined_call_operand.vmem [shape: bf16[128,128], index: 0, kind: input, shape index: {}]   ;;  %s873_s1 = inlined_call_operand.vmem [shape: bf16[128,128], index: 1, kind: input, shape index: {}]   ;;  %s874_s2 = inlined_call_operand.vmem [shape: f32[128,1], index: 2, kind: input, shape index: {}]   ;;  %s875_s3 = inlined_call_operand.vmem [shape: f32[1,128], index: 3, kind: input, shape index: {}]   ;;  %s876_s4 = inlined_call_operand.hbm [shape: bf16[128,128], index: 4, kind: output, shape index: {}]  }
   0x1   :  { %v673_v0 = vld [vmem:[%s873_s1 + $0x38] sm:$0xff]   ;;  %v674_v1 = vld [vmem:[%s873_s1 + $0x30] sm:$0xff]   ;;  %672 = vset.pattern.permute.xlu1 %v711_v2  ;;  %671 = vset.pattern.permute.xlu0 %v711_v2  ;;  %v675_v3 = vld [vmem:[%s873_s1 + $0x28] sm:$0xff]  }
   0x2   :  { %619 = vmatprep.subr.bf16.mxu0 %v673_v0  ;;  %651 = vmatprep.subr.bf16.mxu1 %v673_v0  ;;  %v681_v4 = vld [vmem:[%s872_s0] sm:$0xff]   ;;  %v246_v7 = vld [vmem:[%s874_s2 + $0x10] sm:$0xff]  ;;  %v247_v9 = vld [vmem:[%s874_s2 + $0x18] sm:$0xff] }
   0x3   :  { %620 = vmatpush3.bf16.xpose.msra.mxu0 %v673_v0  ;;  %659 = vmatpush3.bf16.xpose.msra.mxu1 %v673_v0  ;;  %v682_v5 = vld [vmem:[%s872_s0 + $0x20] sm:$0xff]   ;;  %v245_v10 = vld [vmem:[%s874_s2 + $0x8] sm:$0xff] }
   0x4   :  { %621 = vmatprep.subr.bf16.mxu0 %v674_v1  ;;  %652 = vmatprep.subr.bf16.mxu1 %v674_v1  ;;  %v676_v6 = vld [vmem:[%s873_s1 + $0x20] sm:$0xff]  }
   0x5   :  { %635 = vmatprep.mubr.bf16.mxu0 %v681_v4  ;;  %643 = vmatprep.mubr.bf16.mxu1 %v682_v5  ;;  %v244_v8 = vld [vmem:[%s874_s2] sm:$0xff] }
   0x6   :  { %273 = vperm.xlu1 %672, %v246_v7   ;;  %263 = vperm.xlu0 %671, %v244_v8  }
   0xa   :  { %278 = vperm.xlu1 %672, %v247_v9   ;;  %268 = vperm.xlu0 %671, %v245_v10  }
   0xb   :  { %622 = vmatpush3.bf16.xpose.msra.mxu0 %v674_v1  ;;  %660 = vmatpush3.bf16.xpose.msra.mxu1 %v674_v1 }
   0xc   :  { %623 = vmatprep.subr.bf16.mxu0 %v675_v3  ;;  %653 = vmatprep.subr.bf16.mxu1 %v675_v3 }
  0x13   :  { %624 = vmatpush3.bf16.xpose.msra.mxu0 %v675_v3  ;;  %661 = vmatpush3.bf16.xpose.msra.mxu1 %v675_v3 }
  0x14   :  { %625 = vmatprep.subr.bf16.mxu0 %v676_v6  ;;  %654 = vmatprep.subr.bf16.mxu1 %v676_v6 }
  0x15   :  { %9 = vsyncpa [#allocation3], 0  ;;  %v249_v11 = vld [vmem:[%s874_s2 + $0x28] sm:$0xff]  ;;  %v248_v12 = vld [vmem:[%s874_s2 + $0x20] sm:$0xff] }
  0x16   :  { %v677_v13 = vld [vmem:[%s873_s1 + $0x18] sm:$0xff]   ;;  %288 = vperm.xlu1 %672, %v249_v11   ;;  %283 = vperm.xlu0 %671, %v248_v12   ;;  %v250_v15 = vld [vmem:[%s874_s2 + $0x30] sm:$0xff]  ;;  %v253_v16 = vld [vmem:[%s874_s2 + $0x48] sm:$0xff] }
  0x17   :  { %v251_v14 = vld [vmem:[%s874_s2 + $0x38] sm:$0xff]  ;;  %v252_v17 = vld [vmem:[%s874_s2 + $0x40] sm:$0xff]  ;;  %v678_v18 = vld [vmem:[%s873_s1 + $0x10] sm:$0xff]  }
  0x18   :  { %v255_v19 = vld [vmem:[%s874_s2 + $0x58] sm:$0xff]  ;;  %v254_v20 = vld [vmem:[%s874_s2 + $0x50] sm:$0xff]  ;;  %v257_v21 = vld [vmem:[%s874_s2 + $0x68] sm:$0xff] }
  0x19   :  { %v256_v22 = vld [vmem:[%s874_s2 + $0x60] sm:$0xff]  ;;  %v679_v23 = vld [vmem:[%s873_s1 + $0x8] sm:$0xff]   ;;  %v259_v24 = vld [vmem:[%s874_s2 + $0x78] sm:$0xff] }
  0x1a   :  { %298 = vperm.xlu1 %672, %v251_v14   ;;  %293 = vperm.xlu0 %671, %v250_v15   ;;  %v258_v25 = vld [vmem:[%s874_s2 + $0x70] sm:$0xff]  ;;  %v680_v26 = vld [vmem:[%s873_s1] sm:$0xff]   ;;  %v683_v27 = vld [vmem:[%s872_s0 + $0x8] sm:$0xff]  }
  0x1b   :  { %626 = vmatpush3.bf16.xpose.msra.mxu0 %v676_v6  ;;  %662 = vmatpush3.bf16.xpose.msra.mxu1 %v676_v6  ;;  %v684_v28 = vld [vmem:[%s872_s0 + $0x28] sm:$0xff]   ;;  %v685_v29 = vld [vmem:[%s872_s0 + $0x10] sm:$0xff]   ;;  %v687_v31 = vld [vmem:[%s872_s0 + $0x18] sm:$0xff]  }
  0x1c   :  { %627 = vmatprep.subr.bf16.mxu0 %v677_v13  ;;  %655 = vmatprep.subr.bf16.mxu1 %v677_v13  ;;  %v686_v30 = vld [vmem:[%s872_s0 + $0x30] sm:$0xff]   ;;  %v688_v32 = vld [vmem:[%s872_s0 + $0x38] sm:$0xff]   ;;  %v839_v45 = vld [vmem:[%s875_s3] ss:$0 sm:$0xff]  ;;  %s712_s0 = smov [#allocation2]  }
  0x1d   :  { %s496_s3 = sshll.u32 %s712_s0, 4  ;;  %s497_s3 = int_to_ptr.vmem [resolvable:$true] %s496_s3 }
  0x1e   :  { %308 = vperm.xlu1 %672, %v253_v16   ;;  %303 = vperm.xlu0 %671, %v252_v17   ;;  %s689_s27 = scalar_lea.vmem %s497_s3, 1024  ;;  %p694_p1 = scmp.lt.s32.totalorder %s497_s3, %s497_s3 }
  0x1f   :  { %p690_p0 = scmp.ne.s32.totalorder %s497_s3, %s689_s27  ;;  %p695_p2 = scmp.lt.s32.totalorder %s689_s27, %s689_s27 }
  0x21   :  { %p696_p3 = por %p695_p2, %p694_p1 }
  0x22   :  { %318 = vperm.xlu1 %672, %v255_v19   ;;  %313 = vperm.xlu0 %671, %v254_v20  }
  0x23   :  { %628 = vmatpush3.bf16.xpose.msra.mxu0 %v677_v13  ;;  %663 = vmatpush3.bf16.xpose.msra.mxu1 %v677_v13  ;;  %p697_p4 = pnand %p696_p3, %p690_p0 }
  0x24   :  { %629 = vmatprep.subr.bf16.mxu0 %v678_v18  ;;  %656 = vmatprep.subr.bf16.mxu1 %v678_v18 }
  0x26   :  { %328 = vperm.xlu1 %672, %v257_v21   ;;  %323 = vperm.xlu0 %671, %v256_v22  }
  0x2a   :  { %338 = vperm.xlu1 %672, %v259_v24   ;;  %333 = vperm.xlu0 %671, %v258_v25  }
  0x2b   :  { %630 = vmatpush3.bf16.xpose.msra.mxu0 %v678_v18  ;;  %664 = vmatpush3.bf16.xpose.msra.mxu1 %v678_v18 }
  0x2c   :  { %631 = vmatprep.subr.bf16.mxu0 %v679_v23  ;;  %657 = vmatprep.subr.bf16.mxu1 %v679_v23 }
  0x33   :  { %632 = vmatpush3.bf16.xpose.msra.mxu0 %v679_v23  ;;  %665 = vmatpush3.bf16.xpose.msra.mxu1 %v679_v23 }
  0x34   :  { %633 = vmatprep.subr.bf16.mxu0 %v680_v26  ;;  %658 = vmatprep.subr.bf16.mxu1 %v680_v26 }
  0x3b   :  { %634 = vmatpush3.bf16.xpose.msra.mxu0 %v680_v26  ;;  %666 = vmatpush3.bf16.xpose.msra.mxu1 %v680_v26 }
  0x42   :  { %636 = vmatmul.mubr.bf16.vlgmr.msra.gmra.mxu0 %v683_v27  ;;  %644 = vmatmul.mubr.bf16.vlgmr.msra.gmra.mxu1 %v684_v28 }
  0x43   :  { %639 = vmatprep.mubr.bf16.mxu0 %v685_v29  ;;  %647 = vmatprep.mubr.bf16.mxu1 %v686_v30 }
  0x4a   :  { %640 = vmatmul.mubr.bf16.gmra.mxu0 %v687_v31  ;;  %648 = vmatmul.mubr.bf16.gmra.mxu1 %v688_v32 }
  0x81   :  { %v264_v33 = vpop.permute.xlu0 %263  ;;  %v274_v34 = vpop.permute.xlu1 %273 }
  0x82   :  { %v349_v51 = vadd.f32 %v839_v45, %v274_v34  ;;  %v347_v52 = vadd.f32 %v839_v45, %v264_v33 }
  0x85   :  { %v269_v35 = vpop.permute.xlu0 %268  ;;  %v279_v36 = vpop.permute.xlu1 %278 }
  0x86   :  { %v350_v55 = vadd.f32 %v839_v45, %v279_v36  ;;  %v348_v60 = vadd.f32 %v839_v45, %v269_v35 }
  0x91   :  { %v284_v37 = vpop.permute.xlu0 %283  ;;  %v289_v38 = vpop.permute.xlu1 %288 }
  0x92   :  { %v847_v61 = vadd.f32 %v839_v45, %v289_v38  ;;  %v850_v62 = vadd.f32 %v839_v45, %v284_v37 }
  0x95   :  { %v294_v39 = vpop.permute.xlu0 %293  ;;  %v299_v40 = vpop.permute.xlu1 %298 }
  0x96   :  { %v853_v63 = vadd.f32 %v839_v45, %v299_v40  ;;  %v856_v2 = vadd.f32 %v839_v45, %v294_v39 }
  0x99   :  { %v304_v41 = vpop.permute.xlu0 %303  ;;  %v309_v42 = vpop.permute.xlu1 %308 }
  0x9a   :  { %v355_v3 = vadd.f32 %v839_v45, %v304_v41  ;;  %v356_v7 = vadd.f32 %v839_v45, %v309_v42 }
  0x9d   :  { %v314_v43 = vpop.permute.xlu0 %313  ;;  %v319_v44 = vpop.permute.xlu1 %318 }
  0x9e   :  { %v357_v56 = vadd.f32 %v839_v45, %v314_v43  ;;  %v358_v8 = vadd.f32 %v839_v45, %v319_v44 }
  0xa1   :  { %v324_v46 = vpop.permute.xlu0 %323  ;;  %v329_v57 = vpop.permute.xlu1 %328 }
  0xa2   :  { %v360_v17 = vadd.f32 %v839_v45, %v329_v57  ;;  %v359_v44 = vadd.f32 %v839_v45, %v324_v46 }
  0xa5   :  { %v334_v4 = vpop.permute.xlu0 %333  ;;  %v339_v23 = vpop.permute.xlu1 %338 }
  0xa6   :  { %v361_v18 = vadd.f32 %v839_v45, %v334_v4 }
 0x102   :  { %v637_v47 = vpop.f32.mrf.mxu0  ;;  %v645_v48 = vpop.f32.mrf.mxu1 }
 0x103   :  { %v365_v49 = vmul.f32 2.0, %v637_v47  ;;  %v373_v50 = vmul.f32 2.0, %v645_v48  ;;  %v362_v47 = vadd.f32 %v839_v45, %v339_v23 }
 0x104   :  { %v181_v53 = vpop.f32.mrf.mxu0  ;;  %v213_v54 = vpop.f32.mrf.mxu1 }
 0x105   :  { %v363_v58 = vmul.f32 2.0, %v181_v53  ;;  %v371_v59 = vmul.f32 2.0, %v213_v54  ;;  %v381_v5 = vsub.f32 %v349_v51, %v365_v49  ;;  %v389_v6 = vsub.f32 %v357_v56, %v373_v50 }
 0x106   :  { %v638_v0 = vpop.f32.mrf.mxu0  ;;  %v646_v1 = vpop.f32.mrf.mxu1 }
 0x107   :  { %v366_v9 = vmul.f32 2.0, %v638_v0  ;;  %v374_v10 = vmul.f32 2.0, %v646_v1  ;;  %v379_v13 = vsub.f32 %v347_v52, %v363_v58  ;;  %v387_v14 = vsub.f32 %v355_v3, %v371_v59 }
 0x108   :  { %v184_v11 = vpop.f32.mrf.mxu0  ;;  %v216_v12 = vpop.f32.mrf.mxu1  ;;  %v397_v24 = vmax.f32 %v381_v5, 0.0  ;;  %v405_v25 = vmax.f32 %v389_v6, 0.0 }
 0x109   :  { %v364_v15 = vmul.f32 2.0, %v184_v11  ;;  %v372_v16 = vmul.f32 2.0, %v216_v12  ;;  %v382_v19 = vsub.f32 %v350_v55, %v366_v9  ;;  %v390_v20 = vsub.f32 %v358_v8, %v374_v10 }
 0x10a   :  { %v641_v21 = vpop.f32.mrf.mxu0  ;;  %v649_v22 = vpop.f32.mrf.mxu1  ;;  %v395_v34 = vmax.f32 %v379_v13, 0.0  ;;  %v403_v35 = vmax.f32 %v387_v14, 0.0 }
 0x10b   :  { %v380_v26 = vsub.f32 %v348_v60, %v364_v15  ;;  %v388_v27 = vsub.f32 %v356_v7, %v372_v16  ;;  %v398_v28 = vmax.f32 %v382_v19, 0.0  ;;  %v406_v29 = vmax.f32 %v390_v20, 0.0 }
 0x10c   :  { %v369_v30 = vmul.f32 2.0, %v641_v21  ;;  %v377_v31 = vmul.f32 2.0, %v649_v22  ;;  %v197_v32 = vpop.f32.mrf.mxu0  ;;  %v229_v33 = vpop.f32.mrf.mxu1 }
 0x10d   :  { %v396_v36 = vmax.f32 %v380_v26, 0.0  ;;  %v404_v37 = vmax.f32 %v388_v27, 0.0  ;;  %v564_v38 = vpack.c.bf16 %v398_v28, %v397_v24  ;;  %v584_v39 = vpack.c.bf16 %v406_v29, %v405_v25 }
 0x10e   :  { %v367_v40 = vmul.f32 2.0, %v197_v32  ;;  %v375_v41 = vmul.f32 2.0, %v229_v33  ;;  %v642_v42 = vpop.f32.mrf.mxu0  ;;  %v650_v43 = vpop.f32.mrf.mxu1  ;;  %v385_v50 = vsub.f32 %v856_v2, %v369_v30  ;;  %v393_v51 = vsub.f32 %v361_v18, %v377_v31 }
 0x10f   :  { %v559_v48 = vpack.c.bf16 %v396_v36, %v395_v34  ;;  %v579_v49 = vpack.c.bf16 %v404_v37, %v403_v35  ;;  %596 = vst [vmem:[#allocation2 + $0x8] sm:$0xff] %v564_v38   ;;  %600 = vst [vmem:[#allocation2 + $0x28] sm:$0xff] %v584_v39   ;;  %v370_v52 = vmul.f32 2.0, %v642_v42  ;;  %v378_v53 = vmul.f32 2.0, %v650_v43 }
 0x110   :  { %v200_v54 = vpop.f32.mrf.mxu0  ;;  %v232_v55 = vpop.f32.mrf.mxu1  ;;  %v383_v56 = vsub.f32 %v850_v62, %v367_v40  ;;  %v391_v57 = vsub.f32 %v359_v44, %v375_v41  ;;  %v401_v1 = vmax.f32 %v385_v50, 0.0  ;;  %v409_v2 = vmax.f32 %v393_v51, 0.0 }
 0x111   :  { %560 = vst [vmem:[#allocation2] sm:$0xff] %v559_v48   ;;  %599 = vst [vmem:[#allocation2 + $0x20] sm:$0xff] %v579_v49   ;;  %v368_v58 = vmul.f32 2.0, %v200_v54  ;;  %v376_v46 = vmul.f32 2.0, %v232_v55  ;;  %v386_v45 = vsub.f32 %v853_v63, %v370_v52  ;;  %v394_v59 = vsub.f32 %v362_v47, %v378_v53 }
 0x112   :  { %v399_v5 = vmax.f32 %v383_v56, 0.0  ;;  %v407_v6 = vmax.f32 %v391_v57, 0.0 }
 0x113   :  { %v384_v60 = vsub.f32 %v847_v61, %v368_v58  ;;  %v392_v0 = vsub.f32 %v360_v17, %v376_v46  ;;  %v402_v3 = vmax.f32 %v386_v45, 0.0  ;;  %v410_v4 = vmax.f32 %v394_v59, 0.0 }
 0x115   :  { %v400_v7 = vmax.f32 %v384_v60, 0.0  ;;  %v408_v8 = vmax.f32 %v392_v0, 0.0  ;;  %v574_v62 = vpack.c.bf16 %v402_v3, %v401_v1  ;;  %v594_v9 = vpack.c.bf16 %v410_v4, %v409_v2 }
 0x117   :  { %v569_v10 = vpack.c.bf16 %v400_v7, %v399_v5  ;;  %v589_v11 = vpack.c.bf16 %v408_v8, %v407_v6  ;;  %598 = vst [vmem:[#allocation2 + $0x18] sm:$0xff] %v574_v62   ;;  %602 = vst [vmem:[#allocation2 + $0x38] sm:$0xff] %v594_v9  }
 0x119   :  { %597 = vst [vmem:[#allocation2 + $0x10] sm:$0xff] %v569_v10   ;;  %601 = vst [vmem:[#allocation2 + $0x30] sm:$0xff] %v589_v11  }
 0x11a   :  { %700 = shalt.err (!%p697_p4)
}
 0x11b   :  { %s713_s28 = smov 64   ;;  %s714_s29 = smov 4  }
 0x11c   :  { %502 = dma.vmem_to_hbm [thread:$0]  %s497_s3, 1024, %s876_s4, [#allocation3], %s713_s28, %s713_s28, %s714_s29  }
 0x11d   :  { %709 = dma.done.wait [#allocation3], 1024  }
 0x11e   :  { %710 = vsyncadd [#allocation3], 4294966272 }
 0x11f   :  { %506 = vsyncpa [#allocation3], 1 }

</bundles_post_ra>
